<compile_context>
chip_gen: v5e
topology: v5e:2x2
jax: 0.10.0
libtpu: 0.0.40
codegen_flags: <defaults>
</compile_context>

<pallas_src>
import functools

import jax
import jax.numpy as jnp
from jax.experimental import pallas as pl
from jax.experimental.pallas import tpu as pltpu

_EPS = 1e-5
_INV_SQRT2 = 0.7071067811865476


def _round_up(x, m):
    return ((x + m - 1) // m) * m


def _fused_mlp_kernel(x_ref, p_ref, o_ref, *, layer_meta, eps):
    """x_ref: (N, in_dim) f32.  p_ref: packed param slab (rows, lane) f32.

    layer_meta: tuple of (w_row_off, gb_row_off, K, F) static Python ints.
    """
    h = x_ref[...]                                            # (N, K0) f32
    for (w_off, gb_off, K, F) in layer_meta:                  # static unroll
        # Static, tile-aligned views into the packed slab (no extra DMAs).
        w = p_ref[w_off:w_off + K, 0:F]                       # (K, F)
        gb = p_ref[gb_off:gb_off + 8, 0:F]                    # rows: 0=gamma, 1=beta
        # Linear (bias omitted: cancelled exactly by BN batch-mean subtraction).
        y = jnp.dot(h, w, preferred_element_type=jnp.float32)  # MXU, f32 acc
        # BatchNorm1d (training mode), folded into one per-feature FMA.
        mean = jnp.mean(y, axis=0, keepdims=True)               # (1, F)
        var = jnp.mean((y - mean) ** 2, axis=0, keepdims=True)  # biased variance
        scale = jax.lax.rsqrt(var + eps) * gb[0:1, :]            # (1, F)
        shift = gb[1:2, :] - mean * scale                        # (1, F)
        z = y * scale + shift
        # Exact GELU: 0.5 * z * (1 + erf(z / sqrt(2)))  (PyTorch default).
        h = 0.5 * z * (1.0 + jax.lax.erf(z * _INV_SQRT2))
    o_ref[...] = h


def pack_mlp_params(params):
    """One-time packing of all layers into a single lane-aligned f32 slab.

    params: list of (w(K,F), b(F), gamma(F), beta(F)).
    Returns (slab (rows, lane) f32, layer_meta tuple of (w_off, gb_off, K, F)).
    Layout per layer: K (row-padded to 8) rows of W, then an 8-row block whose
    rows 0/1 hold gamma/beta; everything zero-padded to the common lane width.
    """
    lane = 0
    for (w, _, _, _) in params:
        lane = max(lane, _round_up(w.shape[1], 128))

    meta = []
    rows = 0
    for (w, _, _, _) in params:
        K, F = w.shape
        k_pad = _round_up(K, 8)
        meta.append((rows, rows + k_pad, K, F))
        rows += k_pad + 8

    slab = jnp.zeros((_round_up(rows, 8), lane), jnp.float32)
    for (w, b, gamma, beta), (w_off, gb_off, K, F) in zip(params, meta):
        del b  # exactly cancelled by BN training-mode mean subtraction
        slab = slab.at[w_off:w_off + K, :F].set(w.astype(jnp.float32))
        slab = slab.at[gb_off, :F].set(gamma.astype(jnp.float32))
        slab = slab.at[gb_off + 1, :F].set(beta.astype(jnp.float32))
    return slab, tuple(meta)


def mlp_forward(x, param_slab, layer_meta):
    """x: (N, in_dim) f32.  param_slab/layer_meta from pack_mlp_params().

    Runs the entire MLP (every Linear->BN->GELU block, incl. the final one,
    since final_norm=final_act=True) in ONE pallas_call with whole-array VMEM
    blocks: 2 input DMAs + 1 output DMA, lane-dense output stores.
    """
    N = x.shape[0]
    out_dim = layer_meta[-1][3]

    flops = 2 * N * sum(K * F for (_, _, K, F) in layer_meta)
    transcendentals = N * sum(F for (_, _, _, F) in layer_meta)
    bytes_accessed = 4 * (x.size + param_slab.size + N * out_dim)

    vmem_spec = pl.BlockSpec(memory_space=pltpu.MemorySpace.VMEM)
    kernel = functools.partial(_fused_mlp_kernel, layer_meta=layer_meta, eps=_EPS)

    return pl.pallas_call(
        kernel,
        out_shape=jax.ShapeDtypeStruct((N, out_dim), jnp.float32),
        in_specs=[vmem_spec, vmem_spec],
        out_specs=vmem_spec,
        cost_estimate=pl.CostEstimate(
            flops=int(flops),
            transcendentals=int(transcendentals),
            bytes_accessed=int(bytes_accessed),
        ),
    )(x, param_slab)


def init_mlp_params(key, in_dim, out_dim, hidden_dim):
    """Deterministic parameter construction mirroring the PyTorch __init__."""
    dims = [in_dim] + list(hidden_dim) + [out_dim]
    params = []
    for i in range(len(dims) - 1):
        k_in, k_out = dims[i], dims[i + 1]
        key, kw, kb = jax.random.split(key, 3)
        bound = 1.0 / jnp.sqrt(jnp.float32(k_in))
        w = jax.random.uniform(kw, (k_in, k_out), jnp.float32, -bound, bound)
        b = jax.random.uniform(kb, (k_out,), jnp.float32, -bound, bound)
        gamma = jnp.ones((k_out,), jnp.float32)   # BatchNorm1d weight
        beta = jnp.zeros((k_out,), jnp.float32)   # BatchNorm1d bias
        params.append((w, b, gamma, beta))
    return params


if __name__ == "__main__":
    key = jax.random.PRNGKey(0)
    key, kx = jax.random.split(key)

    # Small shapes consistent with the module: batch=8, in_dim=32,
    # hidden=[128, 256, 128], out_dim=128 (4 Linear->BN->GELU blocks).
    N, in_dim, out_dim = 8, 32, 128
    hidden_dim = [128, 256, 128]

    x = jax.random.normal(kx, (N, in_dim), jnp.float32)
    params = init_mlp_params(key, in_dim, out_dim, hidden_dim)

    # One-time packing (hoisted out of the forward path).
    param_slab, layer_meta = pack_mlp_params(params)

    out = mlp_forward(x, param_slab, layer_meta)
    jax.block_until_ready(out)

    assert out.shape == (N, out_dim)
    assert out.dtype == jnp.float32
    assert bool(jnp.all(jnp.isfinite(out)))
    print("KERNEL_OK")
</pallas_src>

<mosaic_0001>
module attributes {stable_mosaic.version = 11 : i64} {
  func.func @_fused_mlp_kernel(%arg0: memref<8x32xf32, #tpu.memory_space<vmem>>, %arg1: memref<576x256xf32, #tpu.memory_space<vmem>>, %arg2: memref<8x128xf32, #tpu.memory_space<vmem>>) attributes {dimension_semantics = [], scalar_prefetch = 0 : i64, scratch_operands = 0 : i64, tpu.core_type = #tpu.core_type<tc>} {
    %c0 = arith.constant 0 : index
    %c0_0 = arith.constant 0 : index
    %0 = vector.load %arg0[%c0, %c0_0] : memref<8x32xf32, #tpu.memory_space<vmem>>, vector<8x32xf32>
    %c0_1 = arith.constant 0 : index
    %c0_2 = arith.constant 0 : index
    %1 = vector.load %arg1[%c0_1, %c0_2] : memref<576x256xf32, #tpu.memory_space<vmem>>, vector<32x128xf32>
    %c32 = arith.constant 32 : index
    %c0_3 = arith.constant 0 : index
    %2 = vector.load %arg1[%c32, %c0_3] : memref<576x256xf32, #tpu.memory_space<vmem>>, vector<8x128xf32>
    %cst = arith.constant dense<0.000000e+00> : vector<8x128xf32>
    %3 = tpu.matmul %0, %1, %cst {dimension_numbers = #tpu.dot_dimension_numbers<[1], [0], [0], [1], [0, 0, 1, 1], [], []>} : vector<8x32xf32>, vector<32x128xf32>, vector<8x128xf32> -> vector<8x128xf32>
    %cst_4 = arith.constant dense<0.000000e+00> : vector<128xf32>
    %4 = vector.multi_reduction <add>, %3, %cst_4 [0] : vector<8x128xf32> to vector<128xf32>
    %5 = vector.shape_cast %4 : vector<128xf32> to vector<1x128xf32>
    %cst_5 = arith.constant 8.000000e+00 : f32
    %6 = vector.broadcast %cst_5 : f32 to vector<1x128xf32>
    %7 = arith.divf %5, %6 : vector<1x128xf32>
    %8 = vector.broadcast %7 : vector<1x128xf32> to vector<8x128xf32>
    %9 = arith.subf %3, %8 : vector<8x128xf32>
    %10 = arith.mulf %9, %9 : vector<8x128xf32>
    %cst_6 = arith.constant dense<0.000000e+00> : vector<128xf32>
    %11 = vector.multi_reduction <add>, %10, %cst_6 [0] : vector<8x128xf32> to vector<128xf32>
    %12 = vector.shape_cast %11 : vector<128xf32> to vector<1x128xf32>
    %cst_7 = arith.constant 8.000000e+00 : f32
    %13 = vector.broadcast %cst_7 : f32 to vector<1x128xf32>
    %14 = arith.divf %12, %13 : vector<1x128xf32>
    %cst_8 = arith.constant 9.99999974E-6 : f32
    %15 = vector.broadcast %cst_8 : f32 to vector<1x128xf32>
    %16 = arith.addf %14, %15 : vector<1x128xf32>
    %17 = math.rsqrt %16 : vector<1x128xf32>
    %18 = vector.extract_strided_slice %2 {offsets = [0, 0], sizes = [1, 128], strides = [1, 1]} : vector<8x128xf32> to vector<1x128xf32>
    %19 = arith.mulf %17, %18 : vector<1x128xf32>
    %20 = vector.extract_strided_slice %2 {offsets = [1, 0], sizes = [1, 128], strides = [1, 1]} : vector<8x128xf32> to vector<1x128xf32>
    %21 = arith.mulf %7, %19 : vector<1x128xf32>
    %22 = arith.subf %20, %21 : vector<1x128xf32>
    %23 = vector.broadcast %19 : vector<1x128xf32> to vector<8x128xf32>
    %24 = arith.mulf %3, %23 : vector<8x128xf32>
    %25 = vector.broadcast %22 : vector<1x128xf32> to vector<8x128xf32>
    %26 = arith.addf %24, %25 : vector<8x128xf32>
    %cst_9 = arith.constant 5.000000e-01 : f32
    %27 = vector.broadcast %cst_9 : f32 to vector<8x128xf32>
    %28 = arith.mulf %27, %26 : vector<8x128xf32>
    %cst_10 = arith.constant 0.707106769 : f32
    %29 = vector.broadcast %cst_10 : f32 to vector<8x128xf32>
    %30 = arith.mulf %26, %29 : vector<8x128xf32>
    %31 = math.erf %30 : vector<8x128xf32>
    %cst_11 = arith.constant 1.000000e+00 : f32
    %32 = vector.broadcast %cst_11 : f32 to vector<8x128xf32>
    %33 = arith.addf %32, %31 : vector<8x128xf32>
    %34 = arith.mulf %28, %33 : vector<8x128xf32>
    %c40 = arith.constant 40 : index
    %c0_12 = arith.constant 0 : index
    %35 = vector.load %arg1[%c40, %c0_12] : memref<576x256xf32, #tpu.memory_space<vmem>>, vector<128x256xf32>
    %c168 = arith.constant 168 : index
    %c0_13 = arith.constant 0 : index
    %36 = vector.load %arg1[%c168, %c0_13] : memref<576x256xf32, #tpu.memory_space<vmem>>, vector<8x256xf32>
    %cst_14 = arith.constant dense<0.000000e+00> : vector<8x256xf32>
    %37 = tpu.matmul %34, %35, %cst_14 {dimension_numbers = #tpu.dot_dimension_numbers<[1], [0], [0], [1], [0, 0, 1, 1], [], []>} : vector<8x128xf32>, vector<128x256xf32>, vector<8x256xf32> -> vector<8x256xf32>
    %cst_15 = arith.constant dense<0.000000e+00> : vector<256xf32>
    %38 = vector.multi_reduction <add>, %37, %cst_15 [0] : vector<8x256xf32> to vector<256xf32>
    %39 = vector.shape_cast %38 : vector<256xf32> to vector<1x256xf32>
    %cst_16 = arith.constant 8.000000e+00 : f32
    %40 = vector.broadcast %cst_16 : f32 to vector<1x256xf32>
    %41 = arith.divf %39, %40 : vector<1x256xf32>
    %42 = vector.broadcast %41 : vector<1x256xf32> to vector<8x256xf32>
    %43 = arith.subf %37, %42 : vector<8x256xf32>
    %44 = arith.mulf %43, %43 : vector<8x256xf32>
    %cst_17 = arith.constant dense<0.000000e+00> : vector<256xf32>
    %45 = vector.multi_reduction <add>, %44, %cst_17 [0] : vector<8x256xf32> to vector<256xf32>
    %46 = vector.shape_cast %45 : vector<256xf32> to vector<1x256xf32>
    %cst_18 = arith.constant 8.000000e+00 : f32
    %47 = vector.broadcast %cst_18 : f32 to vector<1x256xf32>
    %48 = arith.divf %46, %47 : vector<1x256xf32>
    %cst_19 = arith.constant 9.99999974E-6 : f32
    %49 = vector.broadcast %cst_19 : f32 to vector<1x256xf32>
    %50 = arith.addf %48, %49 : vector<1x256xf32>
    %51 = math.rsqrt %50 : vector<1x256xf32>
    %52 = vector.extract_strided_slice %36 {offsets = [0, 0], sizes = [1, 256], strides = [1, 1]} : vector<8x256xf32> to vector<1x256xf32>
    %53 = arith.mulf %51, %52 : vector<1x256xf32>
    %54 = vector.extract_strided_slice %36 {offsets = [1, 0], sizes = [1, 256], strides = [1, 1]} : vector<8x256xf32> to vector<1x256xf32>
    %55 = arith.mulf %41, %53 : vector<1x256xf32>
    %56 = arith.subf %54, %55 : vector<1x256xf32>
    %57 = vector.broadcast %53 : vector<1x256xf32> to vector<8x256xf32>
    %58 = arith.mulf %37, %57 : vector<8x256xf32>
    %59 = vector.broadcast %56 : vector<1x256xf32> to vector<8x256xf32>
    %60 = arith.addf %58, %59 : vector<8x256xf32>
    %cst_20 = arith.constant 5.000000e-01 : f32
    %61 = vector.broadcast %cst_20 : f32 to vector<8x256xf32>
    %62 = arith.mulf %61, %60 : vector<8x256xf32>
    %cst_21 = arith.constant 0.707106769 : f32
    %63 = vector.broadcast %cst_21 : f32 to vector<8x256xf32>
    %64 = arith.mulf %60, %63 : vector<8x256xf32>
    %65 = math.erf %64 : vector<8x256xf32>
    %cst_22 = arith.constant 1.000000e+00 : f32
    %66 = vector.broadcast %cst_22 : f32 to vector<8x256xf32>
    %67 = arith.addf %66, %65 : vector<8x256xf32>
    %68 = arith.mulf %62, %67 : vector<8x256xf32>
    %c176 = arith.constant 176 : index
    %c0_23 = arith.constant 0 : index
    %69 = vector.load %arg1[%c176, %c0_23] : memref<576x256xf32, #tpu.memory_space<vmem>>, vector<256x128xf32>
    %c432 = arith.constant 432 : index
    %c0_24 = arith.constant 0 : index
    %70 = vector.load %arg1[%c432, %c0_24] : memref<576x256xf32, #tpu.memory_space<vmem>>, vector<8x128xf32>
    %cst_25 = arith.constant dense<0.000000e+00> : vector<8x128xf32>
    %71 = tpu.matmul %68, %69, %cst_25 {dimension_numbers = #tpu.dot_dimension_numbers<[1], [0], [0], [1], [0, 0, 1, 1], [], []>} : vector<8x256xf32>, vector<256x128xf32>, vector<8x128xf32> -> vector<8x128xf32>
    %cst_26 = arith.constant dense<0.000000e+00> : vector<128xf32>
    %72 = vector.multi_reduction <add>, %71, %cst_26 [0] : vector<8x128xf32> to vector<128xf32>
    %73 = vector.shape_cast %72 : vector<128xf32> to vector<1x128xf32>
    %cst_27 = arith.constant 8.000000e+00 : f32
    %74 = vector.broadcast %cst_27 : f32 to vector<1x128xf32>
    %75 = arith.divf %73, %74 : vector<1x128xf32>
    %76 = vector.broadcast %75 : vector<1x128xf32> to vector<8x128xf32>
    %77 = arith.subf %71, %76 : vector<8x128xf32>
    %78 = arith.mulf %77, %77 : vector<8x128xf32>
    %cst_28 = arith.constant dense<0.000000e+00> : vector<128xf32>
    %79 = vector.multi_reduction <add>, %78, %cst_28 [0] : vector<8x128xf32> to vector<128xf32>
    %80 = vector.shape_cast %79 : vector<128xf32> to vector<1x128xf32>
    %cst_29 = arith.constant 8.000000e+00 : f32
    %81 = vector.broadcast %cst_29 : f32 to vector<1x128xf32>
    %82 = arith.divf %80, %81 : vector<1x128xf32>
    %cst_30 = arith.constant 9.99999974E-6 : f32
    %83 = vector.broadcast %cst_30 : f32 to vector<1x128xf32>
    %84 = arith.addf %82, %83 : vector<1x128xf32>
    %85 = math.rsqrt %84 : vector<1x128xf32>
    %86 = vector.extract_strided_slice %70 {offsets = [0, 0], sizes = [1, 128], strides = [1, 1]} : vector<8x128xf32> to vector<1x128xf32>
    %87 = arith.mulf %85, %86 : vector<1x128xf32>
    %88 = vector.extract_strided_slice %70 {offsets = [1, 0], sizes = [1, 128], strides = [1, 1]} : vector<8x128xf32> to vector<1x128xf32>
    %89 = arith.mulf %75, %87 : vector<1x128xf32>
    %90 = arith.subf %88, %89 : vector<1x128xf32>
    %91 = vector.broadcast %87 : vector<1x128xf32> to vector<8x128xf32>
    %92 = arith.mulf %71, %91 : vector<8x128xf32>
    %93 = vector.broadcast %90 : vector<1x128xf32> to vector<8x128xf32>
    %94 = arith.addf %92, %93 : vector<8x128xf32>
    %cst_31 = arith.constant 5.000000e-01 : f32
    %95 = vector.broadcast %cst_31 : f32 to vector<8x128xf32>
    %96 = arith.mulf %95, %94 : vector<8x128xf32>
    %cst_32 = arith.constant 0.707106769 : f32
    %97 = vector.broadcast %cst_32 : f32 to vector<8x128xf32>
    %98 = arith.mulf %94, %97 : vector<8x128xf32>
    %99 = math.erf %98 : vector<8x128xf32>
    %cst_33 = arith.constant 1.000000e+00 : f32
    %100 = vector.broadcast %cst_33 : f32 to vector<8x128xf32>
    %101 = arith.addf %100, %99 : vector<8x128xf32>
    %102 = arith.mulf %96, %101 : vector<8x128xf32>
    %c440 = arith.constant 440 : index
    %c0_34 = arith.constant 0 : index
    %103 = vector.load %arg1[%c440, %c0_34] : memref<576x256xf32, #tpu.memory_space<vmem>>, vector<128x128xf32>
    %c568 = arith.constant 568 : index
    %c0_35 = arith.constant 0 : index
    %104 = vector.load %arg1[%c568, %c0_35] : memref<576x256xf32, #tpu.memory_space<vmem>>, vector<8x128xf32>
    %cst_36 = arith.constant dense<0.000000e+00> : vector<8x128xf32>
    %105 = tpu.matmul %102, %103, %cst_36 {dimension_numbers = #tpu.dot_dimension_numbers<[1], [0], [0], [1], [0, 0, 1, 1], [], []>} : vector<8x128xf32>, vector<128x128xf32>, vector<8x128xf32> -> vector<8x128xf32>
    %cst_37 = arith.constant dense<0.000000e+00> : vector<128xf32>
    %106 = vector.multi_reduction <add>, %105, %cst_37 [0] : vector<8x128xf32> to vector<128xf32>
    %107 = vector.shape_cast %106 : vector<128xf32> to vector<1x128xf32>
    %cst_38 = arith.constant 8.000000e+00 : f32
    %108 = vector.broadcast %cst_38 : f32 to vector<1x128xf32>
    %109 = arith.divf %107, %108 : vector<1x128xf32>
    %110 = vector.broadcast %109 : vector<1x128xf32> to vector<8x128xf32>
    %111 = arith.subf %105, %110 : vector<8x128xf32>
    %112 = arith.mulf %111, %111 : vector<8x128xf32>
    %cst_39 = arith.constant dense<0.000000e+00> : vector<128xf32>
    %113 = vector.multi_reduction <add>, %112, %cst_39 [0] : vector<8x128xf32> to vector<128xf32>
    %114 = vector.shape_cast %113 : vector<128xf32> to vector<1x128xf32>
    %cst_40 = arith.constant 8.000000e+00 : f32
    %115 = vector.broadcast %cst_40 : f32 to vector<1x128xf32>
    %116 = arith.divf %114, %115 : vector<1x128xf32>
    %cst_41 = arith.constant 9.99999974E-6 : f32
    %117 = vector.broadcast %cst_41 : f32 to vector<1x128xf32>
    %118 = arith.addf %116, %117 : vector<1x128xf32>
    %119 = math.rsqrt %118 : vector<1x128xf32>
    %120 = vector.extract_strided_slice %104 {offsets = [0, 0], sizes = [1, 128], strides = [1, 1]} : vector<8x128xf32> to vector<1x128xf32>
    %121 = arith.mulf %119, %120 : vector<1x128xf32>
    %122 = vector.extract_strided_slice %104 {offsets = [1, 0], sizes = [1, 128], strides = [1, 1]} : vector<8x128xf32> to vector<1x128xf32>
    %123 = arith.mulf %109, %121 : vector<1x128xf32>
    %124 = arith.subf %122, %123 : vector<1x128xf32>
    %125 = vector.broadcast %121 : vector<1x128xf32> to vector<8x128xf32>
    %126 = arith.mulf %105, %125 : vector<8x128xf32>
    %127 = vector.broadcast %124 : vector<1x128xf32> to vector<8x128xf32>
    %128 = arith.addf %126, %127 : vector<8x128xf32>
    %cst_42 = arith.constant 5.000000e-01 : f32
    %129 = vector.broadcast %cst_42 : f32 to vector<8x128xf32>
    %130 = arith.mulf %129, %128 : vector<8x128xf32>
    %cst_43 = arith.constant 0.707106769 : f32
    %131 = vector.broadcast %cst_43 : f32 to vector<8x128xf32>
    %132 = arith.mulf %128, %131 : vector<8x128xf32>
    %133 = math.erf %132 : vector<8x128xf32>
    %cst_44 = arith.constant 1.000000e+00 : f32
    %134 = vector.broadcast %cst_44 : f32 to vector<8x128xf32>
    %135 = arith.addf %134, %133 : vector<8x128xf32>
    %136 = arith.mulf %130, %135 : vector<8x128xf32>
    %c0_45 = arith.constant 0 : index
    %c0_46 = arith.constant 0 : index
    %137 = vector.load %arg2[%c0_45, %c0_46] : memref<8x128xf32, #tpu.memory_space<vmem>>, vector<8x128xf32>
    tpu.vector_store %arg2[%c0_45, %c0_46], %136 {strides = array<i32>} : memref<8x128xf32, #tpu.memory_space<vmem>>, vector<8x128xf32>,
    return
  }
}

</mosaic_0001>

<bundles_post_ra>
// kernel: tpu_custom_call.1
= control target key start
LH: loop header
LB: loop body
LE: loop exit
PB: predicated region body
PF: predicated region fallthrough
CT: control target
= control target key end

     0   :  { %7 = vsyncpa [#allocation3], 0  ;;  %s895_s0 = inlined_call_operand.hbm [shape: f32[8,32], index: 0, kind: input, shape index: {}]   ;;  %s896_s1 = inlined_call_operand.hbm [shape: f32[576,256], index: 1, kind: input, shape index: {}]   ;;  %s897_s2 = inlined_call_operand.hbm [shape: f32[8,128], index: 2, kind: output, shape index: {}]  }
   0x1   :  { %8 = vsyncpa [#allocation6], 0 }
   0x2   :  { %9 = vsyncpa [#allocation4], 0  ;;  %s15_s11 = sshll.u32 %s895_s0, 4  ;;  %s799_s12 = smov [#allocation2]   ;;  %s16_s11 = int_to_ptr.hbm [resolvable:$true] %s15_s11 }
   0x3   :  { %s17_s13 = sshll.u32 %s799_s12, 4  ;;  %s25_s16 = sshll.u32 %s896_s1, 4  ;;  %s18_s13 = int_to_ptr.vmem [resolvable:$true] %s17_s13  ;;  %s26_s16 = int_to_ptr.hbm [resolvable:$true] %s25_s16 }
   0x4   :  { %20 = dma.hbm_to_vmem [thread:$0]  %s16_s11, 128, %s18_s13, [#allocation3]  }
   0x5   :  { %s800_s17 = smov [#allocation5]   ;;  %s801_s19 = smov 256  }
   0x6   :  { %s27_s18 = sshll.u32 %s800_s17, 4  ;;  %s802_s20 = smov 16   ;;  %s28_s18 = int_to_ptr.vmem [resolvable:$true] %s27_s18 }
   0x7   :  { %33 = dma.hbm_to_vmem [thread:$0]  %s26_s16, 18432, %s28_s18, [#allocation6], %s801_s19, %s801_s19, %s802_s20  }
   0x8   :  { %793 = dma.done.wait [#allocation3], 128  }
   0x9   :  { %794 = vsyncadd [#allocation3], 4294967168 }
   0xa   :  { %795 = dma.done.wait [#allocation6], 18432  }
   0xb   :  { %796 = vsyncadd [#allocation6], 4294948864  ;;  %v46_v0 = vld [vmem:[#allocation5 + $0x30] sm:$0xff]  ;;  %v45_v1 = vld [vmem:[#allocation5 + $0x20] sm:$0xff]  ;;  %vm48_vm0 = vcmask 261120   ;;  %v803_v5 = vmov 8.0  }
   0xc   :  { %64 = vmatpush.msra.mxu0 %v46_v0  ;;  %v44_v2 = vld [vmem:[#allocation5 + $0x10] sm:$0xff]  ;;  %v43_v3 = vld [vmem:[#allocation5] sm:$0xff]  ;;  %v42_v4 = vld [vmem:[#allocation2] sm:$0xff]  ;;  %699 = vrcp.f32 %v803_v5  ;;  %s804_s0 = smov [#allocation7]   ;;  %s676_s23 = sshll.u32 %s897_s2, 4  ;;  %s677_s23 = int_to_ptr.hbm [resolvable:$true] %s676_s23 }
   0xd   :  { %v190_v26 = vld [vmem:[#allocation5 + $0x140] sm:$0xff]  ;;  %v191_v27 = vld [vmem:[#allocation5 + $0x148] sm:$0xff]  ;;  %v188_v28 = vld [vmem:[#allocation5 + $0x130] sm:$0xff]  ;;  %s674_s1 = sshll.u32 %s804_s0, 4  ;;  %s675_s1 = int_to_ptr.vmem [resolvable:$true] %s674_s1 }
   0xe   :  { %65 = vmatpush.msra.mxu0 %v45_v1  ;;  %194 = vmatpush.msra.mxu1 %v190_v26  ;;  %v189_v29 = vld [vmem:[#allocation5 + $0x138] sm:$0xff]  ;;  %v186_v31 = vld [vmem:[#allocation5 + $0x120] sm:$0xff]  ;;  %v187_v32 = vld [vmem:[#allocation5 + $0x128] sm:$0xff] }
   0xf   :  { %214 = vmatpush.msra.mxu2 %v191_v27  ;;  %v184_v34 = vld [vmem:[#allocation5 + $0x110] sm:$0xff]  ;;  %v185_v35 = vld [vmem:[#allocation5 + $0x118] sm:$0xff]  ;;  %v182_v37 = vld [vmem:[#allocation5 + $0x100] sm:$0xff] }
  0x10   :  { %66 = vmatpush.msra.mxu0 %v44_v2  ;;  %195 = vmatpush.msra.mxu1 %v188_v28  ;;  %v183_v38 = vld [vmem:[#allocation5 + $0x108] sm:$0xff]  ;;  %v180_v40 = vld [vmem:[#allocation5 + $0xf0] sm:$0xff]  ;;  %v181_v41 = vld [vmem:[#allocation5 + $0xf8] sm:$0xff] }
  0x11   :  { %215 = vmatpush.msra.mxu2 %v189_v29  ;;  %v178_v42 = vld [vmem:[#allocation5 + $0xe0] sm:$0xff]  ;;  %v179_v43 = vld [vmem:[#allocation5 + $0xe8] sm:$0xff]  ;;  %v176_v44 = vld [vmem:[#allocation5 + $0xd0] sm:$0xff] }
  0x12   :  { %67 = vmatpush.msra.mxu0 %v43_v3  ;;  %v700_v6 = vpop.eup %699  ;;  %196 = vmatpush.msra.mxu1 %v186_v31  ;;  %v177_v45 = vld [vmem:[#allocation5 + $0xd8] sm:$0xff]  ;;  %v174_v46 = vld [vmem:[#allocation5 + $0xc0] sm:$0xff]  ;;  %v175_v47 = vld [vmem:[#allocation5 + $0xc8] sm:$0xff] }
  0x13   :  { %687 = vmatmul.msk.f32.vlgmr.msra.gmra.mxu0 %vm48_vm0, %v42_v4  ;;  %v79_v7 = vmul.f32 8.0, %v700_v6  ;;  %vm83_vm1 = vweird.f32 %v700_v6  ;;  %216 = vmatpush.msra.mxu2 %v187_v32  ;;  %v172_v49 = vld [vmem:[#allocation5 + $0xb0] sm:$0xff]  ;;  %v173_v50 = vld [vmem:[#allocation5 + $0xb8] sm:$0xff]  ;;  %v170_v52 = vld [vmem:[#allocation5 + $0xa0] sm:$0xff] }
  0x14   :  { %197 = vmatpush.msra.mxu1 %v184_v34  ;;  %v171_v53 = vld [vmem:[#allocation5 + $0xa8] sm:$0xff]  ;;  %v168_v55 = vld [vmem:[#allocation5 + $0x90] sm:$0xff]  ;;  %v169_v56 = vld [vmem:[#allocation5 + $0x98] sm:$0xff] }
  0x15   :  { %v80_v8 = vsub.f32 1.0, %v79_v7  ;;  %217 = vmatpush.msra.mxu2 %v185_v35  ;;  %v166_v58 = vld [vmem:[#allocation5 + $0x80] sm:$0xff]  ;;  %v167_v59 = vld [vmem:[#allocation5 + $0x88] sm:$0xff]  ;;  %v164_v61 = vld [vmem:[#allocation5 + $0x70] sm:$0xff] }
  0x16   :  { %198 = vmatpush.msra.mxu1 %v182_v37  ;;  %v165_v62 = vld [vmem:[#allocation5 + $0x78] sm:$0xff]  ;;  %v47_v63 = vld [vmem:[#allocation5 + $0x40] sm:$0xff]  ;;  %v163_v2 = vld [vmem:[#allocation5 + $0x68] sm:$0xff] }
  0x17   :  { %v81_v11 = vmul.f32 %v700_v6, %v80_v8  ;;  %218 = vmatpush.msra.mxu2 %v183_v38  ;;  %v162_v1 = vld [vmem:[#allocation5 + $0x60] sm:$0xff]  ;;  %v160_v5 = vld [vmem:[#allocation5 + $0x50] sm:$0xff] }
  0x18   :  { %199 = vmatpush.msra.mxu1 %v180_v40 }
  0x19   :  { %v82_v14 = vadd.f32 %v700_v6, %v81_v11  ;;  %219 = vmatpush.msra.mxu2 %v181_v41 }
  0x1a   :  { %200 = vmatpush.msra.mxu1 %v178_v42 }
  0x1b   :  { %v830_v17 = vsel %vm83_vm1, %v700_v6, %v82_v14  ;;  %220 = vmatpush.msra.mxu2 %v179_v43  ;;  %v161_v6 = vld [vmem:[#allocation5 + $0x58] sm:$0xff] }
  0x1c   :  { %201 = vmatpush.msra.mxu1 %v176_v44 }
  0x1d   :  { %221 = vmatpush.msra.mxu2 %v177_v45 }
  0x1e   :  { %202 = vmatpush.msra.mxu1 %v174_v46 }
  0x1f   :  { %222 = vmatpush.msra.mxu2 %v175_v47 }
  0x20   :  { %203 = vmatpush.msra.mxu1 %v172_v49 }
  0x21   :  { %223 = vmatpush.msra.mxu2 %v173_v50 }
  0x22   :  { %204 = vmatpush.msra.mxu1 %v170_v52 }
  0x23   :  { %224 = vmatpush.msra.mxu2 %v171_v53 }
  0x24   :  { %205 = vmatpush.msra.mxu1 %v168_v55 }
  0x25   :  { %225 = vmatpush.msra.mxu2 %v169_v56 }
  0x26   :  { %206 = vmatpush.msra.mxu1 %v166_v58 }
  0x27   :  { %226 = vmatpush.msra.mxu2 %v167_v59 }
  0x28   :  { %207 = vmatpush.msra.mxu1 %v164_v61 }
  0x29   :  { %227 = vmatpush.msra.mxu2 %v165_v62 }
  0x2a   :  { %208 = vmatpush.msra.mxu1 %v162_v1 }
  0x2b   :  { %228 = vmatpush.msra.mxu2 %v163_v2 }
  0x2c   :  { %209 = vmatpush.msra.mxu1 %v160_v5 }
  0x2d   :  { %229 = vmatpush.msra.mxu2 %v161_v6 }
  0x90   :  { %v826_v9 = vpop.f32.mrf.mxu0 }
  0x91   :  { %v72_v10 = vrot.slane %v826_v9, 4 }
  0x93   :  { %v73_v12 = vadd.f32 %v72_v10, %v826_v9 }
  0x95   :  { %v74_v13 = vrot.slane %v73_v12, 2 }
  0x97   :  { %v75_v15 = vadd.f32 %v74_v13, %v73_v12 }
  0x99   :  { %v76_v16 = vrot.slane %v75_v15, 1 }
  0x9b   :  { %v77_v18 = vadd.f32 %v76_v16, %v75_v15 }
  0x9d   :  { %v833_v19 = vmul.f32 %v830_v17, %v77_v18 }
  0x9f   :  { %v86_v20 = vsub.f32 %v826_v9, %v833_v19 }
  0xa1   :  { %v87_v21 = vmul.f32 %v86_v20, %v86_v20 }
  0xa3   :  { %v88_v22 = vrot.slane %v87_v21, 4 }
  0xa5   :  { %v89_v23 = vadd.f32 %v88_v22, %v87_v21 }
  0xa7   :  { %v90_v24 = vrot.slane %v89_v23, 2 }
  0xa9   :  { %v91_v25 = vadd.f32 %v90_v24, %v89_v23 }
  0xab   :  { %v92_v30 = vrot.slane %v91_v25, 1 }
  0xad   :  { %v93_v33 = vadd.f32 %v92_v30, %v91_v25 }
  0xaf   :  { %v94_v36 = vmul.f32 %v93_v33, %v830_v17 }
  0xb1   :  { %v95_v39 = vadd.f32 1e-05, %v94_v36 }
  0xb3   :  { %701 = vrsqrt.f32 %v95_v39  ;;  %vm102_vm3 = vweird.f32 %v95_v39 }
  0xb9   :  { %v702_v48 = vpop.eup %701 }
  0xba   :  { %v97_v51 = vmul.f32 %v702_v48, %v95_v39  ;;  %vm103_vm2 = vweird.f32 %v702_v48 }
  0xbb   :  { %vm104_vm4 = vmor %vm102_vm3, %vm103_vm2 }
  0xbc   :  { %v98_v54 = vmul.f32 %v702_v48, %v97_v51 }
  0xbe   :  { %v99_v57 = vmul.f32 0.5, %v98_v54 }
  0xc0   :  { %v100_v60 = vsub.f32 1.5, %v99_v57 }
  0xc2   :  { %v101_v0 = vmul.f32 %v702_v48, %v100_v60 }
  0xc4   :  { %v105_v3 = vsel %vm104_vm4, %v702_v48, %v101_v0 }
  0xc5   :  { %v106_v4 = vmul.f32 %v105_v3, %v47_v63 }
  0xc7   :  { %v107_v7 = vmul.f32 %v106_v4, %v833_v19  ;;  %v112_v8 = vperm.slane %v106_v4, 0 }
  0xc9   :  { %v109_v10 = vrot.slane %v107_v7, 7  ;;  %v113_v12 = vmul.f32 %v112_v8, %v826_v9 }
  0xcb   :  { %v111_v11 = vsub.f32 %v47_v63, %v109_v10 }
  0xcd   :  { %v114_v13 = vperm.slane %v111_v11, 1 }
  0xcf   :  { %v115_v14 = vadd.f32 %v114_v13, %v113_v12 }
  0xd1   :  { %v117_v15 = vmul.f32 0.70710677, %v115_v14  ;;  %v116_v51 = vmul.f32 0.5, %v115_v14 }
  0xd3   :  { %v118_v16 = vmul.f32 %v117_v15, %v117_v15 }
  0xd5   :  { %v119_v18 = vmin.f32 %v118_v16, 16.0 }
  0xd7   :  { %v120_v20 = vmul.f32 2.1237322e-06, %v119_v18  ;;  %v131_v21 = vmul.f32 3.8918573e-05, %v119_v18 }
  0xd9   :  { %v121_v22 = vadd.f32 0.00028619796, %v120_v20  ;;  %v132_v23 = vadd.f32 0.001143296, %v131_v21 }
  0xdb   :  { %v122_v24 = vmul.f32 %v121_v22, %v119_v18  ;;  %v133_v25 = vmul.f32 %v132_v23, %v119_v18 }
  0xdd   :  { %v134_v26 = vadd.f32 0.014752088, %v133_v25  ;;  %v123_v19 = vadd.f32 0.0036580483, %v122_v24 }
  0xdf   :  { %v135_v27 = vmul.f32 %v134_v26, %v119_v18  ;;  %v124_v29 = vmul.f32 %v123_v19, %v119_v18 }
  0xe1   :  { %v136_v28 = vadd.f32 0.112945676, %v135_v27  ;;  %v125_v32 = vadd.f32 0.05243302, %v124_v29 }
  0xe3   :  { %v137_v30 = vmul.f32 %v136_v28, %v119_v18  ;;  %v126_v34 = vmul.f32 %v125_v32, %v119_v18 }
  0xe5   :  { %v138_v31 = vadd.f32 0.4994258, %v137_v30  ;;  %v127_v35 = vadd.f32 0.18741608, %v126_v34  ;;  %v411_v30 = vld [vmem:[#allocation5 + $0x250] sm:$0xff]  ;;  %v426_v34 = vld [vmem:[#allocation5 + $0x340] sm:$0xff] }
  0xe6   :  { %429 = vmatpush.msra.mxu3 %v411_v30 }
  0xe7   :  { %v139_v9 = vmul.f32 %v138_v31, %v119_v18  ;;  %v128_v37 = vmul.f32 %v127_v35, %v119_v18  ;;  %v410_v31 = vld [vmem:[#allocation5 + $0x240] sm:$0xff] }
  0xe8   :  { %430 = vmatpush.msra.mxu3 %v410_v31 }
  0xe9   :  { %v140_v33 = vadd.f32 1.0, %v139_v9  ;;  %v129_v41 = vadd.f32 1.1283791, %v128_v37  ;;  %v427_v9 = vld [vmem:[#allocation5 + $0x350] sm:$0xff] }
  0xea   :  { %449 = vmatpush.msrb.mxu0 %v427_v9 }
  0xeb   :  { %703 = vrcp.f32 %v140_v33  ;;  %v152_v40 = vand.u32 2147483648, %v140_v33  ;;  %v150_v43 = vand.u32 2147483647, %v140_v33  ;;  %vm146_vm6 = vweird.f32 %v140_v33 }
  0xec   :  { %v130_v46 = vmul.f32 %v129_v41, %v117_v15  ;;  %450 = vmatpush.msrb.mxu0 %v426_v34  ;;  %v424_v41 = vld [vmem:[#allocation5 + $0x320] sm:$0xff] }
  0xed   :  { %v153_v45 = vor.u32 1.1754944e-38, %v152_v40  ;;  %vm151_vm8 = vcmp.eq.f32.partialorder %v150_v43, 8.507059e+37  ;;  %v192_v43 = vld [vmem:[#allocation5 + $0x150] sm:$0xff] }
  0xf1   :  { %v704_v36 = vpop.eup %703 }
  0xf2   :  { %v142_v38 = vmul.f32 %v704_v36, %v140_v33  ;;  %vm147_vm5 = vweird.f32 %v704_v36  ;;  %v409_v33 = vld [vmem:[#allocation5 + $0x230] sm:$0xff] }
  0xf3   :  { %vm148_vm7 = vmor %vm146_vm6, %vm147_vm5  ;;  %431 = vmatpush.msra.mxu3 %v409_v33 }
  0xf4   :  { %v143_v39 = vsub.f32 1.0, %v142_v38  ;;  %v408_v38 = vld [vmem:[#allocation5 + $0x220] sm:$0xff] }
  0xf5   :  { %432 = vmatpush.msra.mxu3 %v408_v38 }
  0xf6   :  { %v144_v42 = vmul.f32 %v704_v36, %v143_v39 }
  0xf8   :  { %v145_v44 = vadd.f32 %v704_v36, %v144_v42  ;;  %v407_v42 = vld [vmem:[#allocation5 + $0x210] sm:$0xff] }
  0xf9   :  { %433 = vmatpush.msra.mxu3 %v407_v42 }
  0xfa   :  { %v149_v47 = vsel %vm148_vm7, %v704_v36, %v145_v44  ;;  %v425_v36 = vld [vmem:[#allocation5 + $0x330] sm:$0xff] }
  0xfb   :  { %v154_v48 = vsel %vm151_vm8, %v153_v45, %v149_v47  ;;  %451 = vmatpush.msrb.mxu0 %v425_v36  ;;  %v406_v47 = vld [vmem:[#allocation5 + $0x200] sm:$0xff] }
  0xfc   :  { %v155_v49 = vmul.f32 %v154_v48, %v130_v46  ;;  %v423_v46 = vld [vmem:[#allocation5 + $0x310] sm:$0xff]  ;;  %434 = vmatpush.msra.mxu3 %v406_v47 }
  0xfd   :  { %452 = vmatpush.msrb.mxu0 %v424_v41 }
  0xfe   :  { %v688_v50 = vclamps-f32 %v155_v49, 1.0 }
  0xff   :  { %453 = vmatpush.msrb.mxu0 %v423_v46 }
 0x100   :  { %v158_v52 = vadd.f32 1.0, %v688_v50  ;;  %v422_v50 = vld [vmem:[#allocation5 + $0x300] sm:$0xff] }
 0x101   :  { %454 = vmatpush.msrb.mxu0 %v422_v50  ;;  %v413_v50 = vld [vmem:[#allocation5 + $0x270] sm:$0xff] }
 0x102   :  { %v159_v53 = vmul.f32 %v158_v52, %v116_v51  ;;  %v405_v52 = vld [vmem:[#allocation5 + $0x1f0] sm:$0xff] }
 0x103   :  { %435 = vmatpush.msra.mxu3 %v405_v52 }
 0x104   :  { %210 = vmatmul.f32.vlgmr.msra.gmra.mxu1 %v159_v53  ;;  %230 = vmatmul.f32.vlgmr.msra.gmra.mxu2 %v159_v53 }
 0x181   :  { %v840_v54 = vpop.f32.mrf.mxu1 }
 0x182   :  { %v234_v55 = vrot.slane %v840_v54, 4 }
 0x184   :  { %v235_v56 = vadd.f32 %v234_v55, %v840_v54  ;;  %v421_v55 = vld [vmem:[#allocation5 + $0x2f0] sm:$0xff] }
 0x185   :  { %455 = vmatpush.msrb.mxu0 %v421_v55 }
 0x186   :  { %v236_v57 = vrot.slane %v235_v56, 2 }
 0x187   :  { %v844_v58 = vpop.f32.mrf.mxu2 }
 0x188   :  { %v237_v59 = vadd.f32 %v236_v57, %v235_v56  ;;  %v240_v60 = vrot.slane %v844_v58, 4  ;;  %v404_v57 = vld [vmem:[#allocation5 + $0x1e0] sm:$0xff] }
 0x189   :  { %436 = vmatpush.msra.mxu3 %v404_v57 }
 0x18a   :  { %v238_v61 = vrot.slane %v237_v59, 1  ;;  %v241_v62 = vadd.f32 %v240_v60, %v844_v58 }
 0x18c   :  { %v239_v63 = vadd.f32 %v238_v61, %v237_v59  ;;  %v242_v0 = vrot.slane %v241_v62, 2  ;;  %v193_v59 = vld [vmem:[#allocation5 + $0x158] sm:$0xff]  ;;  %v420_v61 = vld [vmem:[#allocation5 + $0x2e0] sm:$0xff] }
 0x18d   :  { %456 = vmatpush.msrb.mxu0 %v420_v61 }
 0x18e   :  { %v849_v1 = vmul.f32 %v239_v63, %v830_v17  ;;  %v243_v2 = vadd.f32 %v242_v0, %v241_v62  ;;  %v403_v63 = vld [vmem:[#allocation5 + $0x1d0] sm:$0xff] }
 0x18f   :  { %437 = vmatpush.msra.mxu3 %v403_v63 }
 0x190   :  { %v248_v3 = vsub.f32 %v840_v54, %v849_v1  ;;  %v244_v4 = vrot.slane %v243_v2, 1 }
 0x192   :  { %v250_v5 = vmul.f32 %v248_v3, %v248_v3  ;;  %v245_v6 = vadd.f32 %v244_v4, %v243_v2  ;;  %v419_v3 = vld [vmem:[#allocation5 + $0x2d0] sm:$0xff] }
 0x193   :  { %457 = vmatpush.msrb.mxu0 %v419_v3 }
 0x194   :  { %v252_v7 = vrot.slane %v250_v5, 4  ;;  %v854_v8 = vmul.f32 %v245_v6, %v830_v17 }
 0x196   :  { %v253_v10 = vadd.f32 %v252_v7, %v250_v5  ;;  %v249_v11 = vsub.f32 %v844_v58, %v854_v8  ;;  %v402_v5 = vld [vmem:[#allocation5 + $0x1c0] sm:$0xff] }
 0x197   :  { %438 = vmatpush.msra.mxu3 %v402_v5 }
 0x198   :  { %v254_v12 = vrot.slane %v253_v10, 2  ;;  %v251_v13 = vmul.f32 %v249_v11, %v249_v11  ;;  %v401_v11 = vld [vmem:[#allocation5 + $0x1b0] sm:$0xff] }
 0x199   :  { %439 = vmatpush.msra.mxu3 %v401_v11 }
 0x19a   :  { %v255_v14 = vadd.f32 %v254_v12, %v253_v10  ;;  %v258_v15 = vrot.slane %v251_v13, 4 }
 0x19c   :  { %v256_v16 = vrot.slane %v255_v14, 1  ;;  %v259_v18 = vadd.f32 %v258_v15, %v251_v13  ;;  %v417_v13 = vld [vmem:[#allocation5 + $0x2b0] sm:$0xff] }
 0x19e   :  { %v257_v20 = vadd.f32 %v256_v16, %v255_v14  ;;  %v260_v21 = vrot.slane %v259_v18, 2  ;;  %v400_v16 = vld [vmem:[#allocation5 + $0x1a0] sm:$0xff] }
 0x19f   :  { %440 = vmatpush.msra.mxu3 %v400_v16 }
 0x1a0   :  { %v264_v22 = vmul.f32 %v257_v20, %v830_v17  ;;  %v261_v23 = vadd.f32 %v260_v21, %v259_v18  ;;  %v416_v20 = vld [vmem:[#allocation5 + $0x2a0] sm:$0xff] }
 0x1a2   :  { %v266_v24 = vadd.f32 1e-05, %v264_v22  ;;  %v262_v25 = vrot.slane %v261_v23, 1  ;;  %v399_v22 = vld [vmem:[#allocation5 + $0x190] sm:$0xff] }
 0x1a3   :  { %441 = vmatpush.msra.mxu3 %v399_v22 }
 0x1a4   :  { %705 = vrsqrt.f32 %v266_v24  ;;  %v263_v26 = vadd.f32 %v262_v25, %v261_v23  ;;  %vm274_vm10 = vweird.f32 %v266_v24  ;;  %v398_v25 = vld [vmem:[#allocation5 + $0x180] sm:$0xff] }
 0x1a5   :  { %442 = vmatpush.msra.mxu3 %v398_v25 }
 0x1a6   :  { %v265_v19 = vmul.f32 %v263_v26, %v830_v17 }
 0x1a8   :  { %v267_v27 = vadd.f32 1e-05, %v265_v19 }
 0x1aa   :  { %v706_v28 = vpop.eup %705  ;;  %707 = vrsqrt.f32 %v267_v27  ;;  %vm284_vm13 = vweird.f32 %v267_v27 }
 0x1ab   :  { %v269_v29 = vmul.f32 %v706_v28, %v266_v24  ;;  %vm275_vm9 = vweird.f32 %v706_v28 }
 0x1ac   :  { %vm276_vm11 = vmor %vm274_vm10, %vm275_vm9 }
 0x1ad   :  { %v270_v32 = vmul.f32 %v706_v28, %v269_v29  ;;  %v396_v29 = vld [vmem:[#allocation5 + $0x160] sm:$0xff] }
 0x1af   :  { %v271_v35 = vmul.f32 0.5, %v270_v32 }
 0x1b0   :  { %v708_v37 = vpop.eup %707 }
 0x1b1   :  { %v272_v39 = vsub.f32 1.5, %v271_v35  ;;  %v279_v40 = vmul.f32 %v708_v37, %v267_v27  ;;  %vm285_vm12 = vweird.f32 %v708_v37  ;;  %v397_v27 = vld [vmem:[#allocation5 + $0x170] sm:$0xff] }
 0x1b2   :  { %vm286_vm14 = vmor %vm284_vm13, %vm285_vm12  ;;  %443 = vmatpush.msra.mxu3 %v397_v27 }
 0x1b3   :  { %v273_v44 = vmul.f32 %v706_v28, %v272_v39  ;;  %v280_v45 = vmul.f32 %v708_v37, %v279_v40 }
 0x1b4   :  { %444 = vmatpush.msra.mxu3 %v396_v29 }
 0x1b5   :  { %v277_v48 = vsel %vm276_vm11, %v706_v28, %v273_v44  ;;  %v281_v49 = vmul.f32 0.5, %v280_v45 }
 0x1b6   :  { %v288_v51 = vmul.f32 %v277_v48, %v192_v43 }
 0x1b7   :  { %v282_v53 = vsub.f32 1.5, %v281_v49  ;;  %v414_v49 = vld [vmem:[#allocation5 + $0x280] sm:$0xff] }
 0x1b8   :  { %v290_v56 = vmul.f32 %v288_v51, %v849_v1  ;;  %v300_v62 = vperm.slane %v288_v51, 0  ;;  %v418_v1 = vld [vmem:[#allocation5 + $0x2c0] sm:$0xff] }
 0x1b9   :  { %v283_v60 = vmul.f32 %v708_v37, %v282_v53  ;;  %458 = vmatpush.msrb.mxu0 %v418_v1 }
 0x1ba   :  { %v294_v0 = vrot.slane %v290_v56, 7  ;;  %v302_v7 = vmul.f32 %v300_v62, %v840_v54  ;;  %v412_v56 = vld [vmem:[#allocation5 + $0x260] sm:$0xff] }
 0x1bb   :  { %v287_v2 = vsel %vm286_vm14, %v708_v37, %v283_v60  ;;  %459 = vmatpush.msrb.mxu0 %v417_v13 }
 0x1bc   :  { %v289_v4 = vmul.f32 %v287_v2, %v193_v59  ;;  %v298_v6 = vsub.f32 %v192_v43, %v294_v0 }
 0x1bd   :  { %460 = vmatpush.msrb.mxu0 %v416_v20 }
 0x1be   :  { %v291_v10 = vmul.f32 %v289_v4, %v854_v8  ;;  %v304_v12 = vperm.slane %v298_v6, 1  ;;  %v301_v15 = vperm.slane %v289_v4, 0  ;;  %v415_v8 = vld [vmem:[#allocation5 + $0x290] sm:$0xff] }
 0x1bf   :  { %461 = vmatpush.msrb.mxu0 %v415_v8 }
 0x1c0   :  { %v295_v14 = vrot.slane %v291_v10, 7  ;;  %v863_v18 = vadd.f32 %v304_v12, %v302_v7  ;;  %v303_v23 = vmul.f32 %v301_v15, %v844_v58 }
 0x1c1   :  { %462 = vmatpush.msrb.mxu0 %v414_v49 }
 0x1c2   :  { %v299_v21 = vsub.f32 %v193_v59, %v295_v14  ;;  %v866_v54 = vmul.f32 0.70710677, %v863_v18 }
 0x1c3   :  { %463 = vmatpush.msrb.mxu0 %v413_v50 }
 0x1c4   :  { %v305_v24 = vperm.slane %v299_v21, 1  ;;  %v312_v26 = vmul.f32 %v866_v54, %v866_v54 }
 0x1c5   :  { %464 = vmatpush.msrb.mxu0 %v412_v56 }
 0x1c6   :  { %v871_v19 = vadd.f32 %v305_v24, %v303_v23  ;;  %v313_v28 = vmin.f32 %v312_v26, 16.0 }
 0x1c8   :  { %v874_v30 = vmul.f32 0.70710677, %v871_v19  ;;  %v314_v31 = vmul.f32 2.1237322e-06, %v313_v28  ;;  %v325_v32 = vmul.f32 3.8918573e-05, %v313_v28 }
 0x1ca   :  { %v352_v58 = vmul.f32 %v874_v30, %v874_v30  ;;  %v315_v9 = vadd.f32 0.00028619796, %v314_v31  ;;  %v326_v33 = vadd.f32 0.001143296, %v325_v32 }
 0x1cc   :  { %v353_v34 = vmin.f32 %v352_v58, 16.0  ;;  %v316_v35 = vmul.f32 %v315_v9, %v313_v28  ;;  %v327_v36 = vmul.f32 %v326_v33, %v313_v28 }
 0x1ce   :  { %v328_v37 = vadd.f32 0.014752088, %v327_v36  ;;  %v354_v38 = vmul.f32 2.1237322e-06, %v353_v34  ;;  %v317_v39 = vadd.f32 0.0036580483, %v316_v35 }
 0x1cf   :  { %v365_v40 = vmul.f32 3.8918573e-05, %v353_v34  ;;  %v308_v36 = vmul.f32 0.5, %v863_v18 }
 0x1d0   :  { %v329_v41 = vmul.f32 %v328_v37, %v313_v28  ;;  %v355_v42 = vadd.f32 0.00028619796, %v354_v38  ;;  %v318_v46 = vmul.f32 %v317_v39, %v313_v28 }
 0x1d1   :  { %v366_v43 = vadd.f32 0.001143296, %v365_v40 }
 0x1d2   :  { %v330_v44 = vadd.f32 0.112945676, %v329_v41  ;;  %v356_v45 = vmul.f32 %v355_v42, %v353_v34  ;;  %v319_v55 = vadd.f32 0.05243302, %v318_v46 }
 0x1d3   :  { %v367_v47 = vmul.f32 %v366_v43, %v353_v34  ;;  %v309_v43 = vmul.f32 0.5, %v871_v19 }
 0x1d4   :  { %v331_v48 = vmul.f32 %v330_v44, %v313_v28  ;;  %v357_v53 = vadd.f32 0.0036580483, %v356_v45  ;;  %v320_v63 = vmul.f32 %v319_v55, %v313_v28 }
 0x1d5   :  { %v368_v51 = vadd.f32 0.014752088, %v367_v47 }
 0x1d6   :  { %v332_v52 = vadd.f32 0.4994258, %v331_v48  ;;  %v358_v62 = vmul.f32 %v357_v53, %v353_v34  ;;  %v321_v4 = vadd.f32 0.18741608, %v320_v63 }
 0x1d7   :  { %v369_v57 = vmul.f32 %v368_v51, %v353_v34 }
 0x1d8   :  { %v333_v59 = vmul.f32 %v332_v52, %v313_v28  ;;  %v359_v3 = vadd.f32 0.05243302, %v358_v62  ;;  %v322_v10 = vmul.f32 %v321_v4, %v313_v28  ;;  %v564_v62 = vld [vmem:[#allocation5 + $0x450] sm:$0xff] }
 0x1d9   :  { %v370_v60 = vadd.f32 0.112945676, %v369_v57 }
 0x1da   :  { %v334_v61 = vadd.f32 1.0, %v333_v59  ;;  %v360_v7 = vmul.f32 %v359_v3, %v353_v34  ;;  %v323_v15 = vadd.f32 1.1283791, %v322_v10  ;;  %v562_v3 = vld [vmem:[#allocation5 + $0x430] sm:$0xff] }
 0x1db   :  { %v371_v0 = vmul.f32 %v370_v60, %v353_v34  ;;  %v558_v10 = vld [vmem:[#allocation5 + $0x3f0] sm:$0xff] }
 0x1dc   :  { %709 = vrcp.f32 %v334_v61  ;;  %v346_v13 = vand.u32 2147483648, %v334_v61  ;;  %v361_v14 = vadd.f32 0.18741608, %v360_v7  ;;  %v344_v20 = vand.u32 2147483647, %v334_v61  ;;  %v559_v7 = vld [vmem:[#allocation5 + $0x400] sm:$0xff] }
 0x1dd   :  { %v372_v2 = vadd.f32 0.4994258, %v371_v0  ;;  %vm340_vm0 = vweird.f32 %v334_v61  ;;  %v324_v25 = vmul.f32 %v323_v15, %v866_v54  ;;  %v563_v0 = vld [vmem:[#allocation5 + $0x440] sm:$0xff] }
 0x1de   :  { %v347_v8 = vor.u32 1.1754944e-38, %v346_v13  ;;  %v362_v23 = vmul.f32 %v361_v14, %v353_v34  ;;  %vm345_vm2 = vcmp.eq.f32.partialorder %v344_v20, 8.507059e+37  ;;  %v556_v13 = vld [vmem:[#allocation5 + $0x3d0] sm:$0xff]  ;;  %v555_v15 = vld [vmem:[#allocation5 + $0x3c0] sm:$0xff] }
 0x1df   :  { %v373_v5 = vmul.f32 %v372_v2, %v353_v34  ;;  %v554_v20 = vld [vmem:[#allocation5 + $0x3b0] sm:$0xff] }
 0x1e0   :  { %v363_v32 = vadd.f32 1.1283791, %v362_v23  ;;  %v552_v23 = vld [vmem:[#allocation5 + $0x390] sm:$0xff] }
 0x1e1   :  { %v374_v6 = vadd.f32 1.0, %v373_v5  ;;  %v561_v5 = vld [vmem:[#allocation5 + $0x420] sm:$0xff] }
 0x1e2   :  { %v710_v1 = vpop.eup %709  ;;  %v364_v54 = vmul.f32 %v363_v32, %v874_v30 }
 0x1e3   :  { %v336_v11 = vmul.f32 %v710_v1, %v334_v61  ;;  %711 = vrcp.f32 %v374_v6  ;;  %vm341_vm15 = vweird.f32 %v710_v1  ;;  %v386_v31 = vand.u32 2147483648, %v374_v6  ;;  %v565_v61 = vld [vmem:[#allocation5 + $0x460] sm:$0xff] }
 0x1e4   :  { %vm342_vm1 = vmor %vm340_vm0, %vm341_vm15  ;;  %v384_v9 = vand.u32 2147483647, %v374_v6  ;;  %vm380_vm4 = vweird.f32 %v374_v6  ;;  %567 = vmatpush.msrb.mxu1 %v565_v61 }
 0x1e5   :  { %v337_v12 = vsub.f32 1.0, %v336_v11  ;;  %v387_v34 = vor.u32 1.1754944e-38, %v386_v31  ;;  %v557_v11 = vld [vmem:[#allocation5 + $0x3e0] sm:$0xff] }
 0x1e6   :  { %vm385_vm6 = vcmp.eq.f32.partialorder %v384_v9, 8.507059e+37  ;;  %568 = vmatpush.msrb.mxu1 %v564_v62 }
 0x1e7   :  { %v338_v16 = vmul.f32 %v710_v1, %v337_v12 }
 0x1e8   :  { %569 = vmatpush.msrb.mxu1 %v563_v0 }
 0x1e9   :  { %v712_v21 = vpop.eup %711  ;;  %v339_v22 = vadd.f32 %v710_v1, %v338_v16 }
 0x1ea   :  { %v376_v24 = vmul.f32 %v712_v21, %v374_v6  ;;  %vm381_vm3 = vweird.f32 %v712_v21  ;;  %570 = vmatpush.msrb.mxu1 %v562_v3 }
 0x1eb   :  { %v343_v26 = vsel %vm342_vm1, %v710_v1, %v339_v22  ;;  %vm382_vm5 = vmor %vm380_vm4, %vm381_vm3  ;;  %v560_v1 = vld [vmem:[#allocation5 + $0x410] sm:$0xff]  ;;  %v553_v22 = vld [vmem:[#allocation5 + $0x3a0] sm:$0xff] }
 0x1ec   :  { %v348_v27 = vsel %vm345_vm2, %v347_v8, %v343_v26  ;;  %v377_v28 = vsub.f32 1.0, %v376_v24  ;;  %571 = vmatpush.msrb.mxu1 %v561_v5  ;;  %v428_v24 = vld [vmem:[#allocation5 + $0x360] sm:$0xff] }
 0x1ed   :  { %v349_v29 = vmul.f32 %v348_v27, %v324_v25  ;;  %v551_v26 = vld [vmem:[#allocation5 + $0x380] sm:$0xff] }
 0x1ee   :  { %v378_v58 = vmul.f32 %v712_v21, %v377_v28  ;;  %572 = vmatpush.msrb.mxu1 %v560_v1 }
 0x1ef   :  { %v689_v33 = vclamps-f32 %v349_v29, 1.0  ;;  %v550_v29 = vld [vmem:[#allocation5 + $0x370] sm:$0xff] }
 0x1f0   :  { %v379_v35 = vadd.f32 %v712_v21, %v378_v58  ;;  %573 = vmatpush.msrb.mxu1 %v559_v7 }
 0x1f1   :  { %v392_v37 = vadd.f32 1.0, %v689_v33 }
 0x1f2   :  { %v383_v38 = vsel %vm382_vm5, %v712_v21, %v379_v35  ;;  %574 = vmatpush.msrb.mxu1 %v558_v10 }
 0x1f3   :  { %v394_v39 = vmul.f32 %v392_v37, %v308_v36  ;;  %v388_v40 = vsel %vm385_vm6, %v387_v34, %v383_v38 }
 0x1f4   :  { %v389_v41 = vmul.f32 %v388_v40, %v364_v54  ;;  %575 = vmatpush.msrb.mxu1 %v557_v11 }
 0x1f5   :  { %445 = vmatmul.f32.vlgmr.msra.gmra.mxu3 %v394_v39 }
 0x1f6   :  { %v690_v42 = vclamps-f32 %v389_v41, 1.0  ;;  %576 = vmatpush.msrb.mxu1 %v556_v13 }
 0x1f8   :  { %v393_v44 = vadd.f32 1.0, %v690_v42  ;;  %577 = vmatpush.msrb.mxu1 %v555_v15 }
 0x1fa   :  { %v395_v45 = vmul.f32 %v393_v44, %v309_v43  ;;  %578 = vmatpush.msrb.mxu1 %v554_v20 }
 0x1fc   :  { %465 = vmatmul.f32.vlgmr.msrb.gmra.mxu0 %v395_v45  ;;  %579 = vmatpush.msrb.mxu1 %v553_v22 }
 0x1fe   :  { %580 = vmatpush.msrb.mxu1 %v552_v23 }
 0x200   :  { %581 = vmatpush.msrb.mxu1 %v551_v26 }
 0x202   :  { %582 = vmatpush.msrb.mxu1 %v550_v29 }
 0x278   :  { %v446_v46 = vpop.f32.mrf.mxu3 }
 0x279   :  { %v466_v47 = vpop.f32.mrf.mxu0 }
 0x27a   :  { %v882_v18 = vadd.f32 %v466_v47, %v446_v46 }
 0x27c   :  { %v469_v48 = vrot.slane %v882_v18, 4 }
 0x27e   :  { %v470_v30 = vadd.f32 %v469_v48, %v882_v18 }
 0x280   :  { %v471_v49 = vrot.slane %v470_v30, 2 }
 0x282   :  { %v472_v50 = vadd.f32 %v471_v49, %v470_v30 }
 0x284   :  { %v473_v51 = vrot.slane %v472_v50, 1 }
 0x286   :  { %v474_v52 = vadd.f32 %v473_v51, %v472_v50 }
 0x288   :  { %v475_v53 = vmul.f32 %v474_v52, %v830_v17 }
 0x28a   :  { %v476_v55 = vsub.f32 %v882_v18, %v475_v53 }
 0x28c   :  { %v477_v19 = vmul.f32 %v476_v55, %v476_v55 }
 0x28e   :  { %v478_v56 = vrot.slane %v477_v19, 4 }
 0x290   :  { %v479_v57 = vadd.f32 %v478_v56, %v477_v19 }
 0x292   :  { %v480_v59 = vrot.slane %v479_v57, 2 }
 0x294   :  { %v481_v60 = vadd.f32 %v480_v59, %v479_v57 }
 0x296   :  { %v482_v63 = vrot.slane %v481_v60, 1 }
 0x298   :  { %v483_v2 = vadd.f32 %v482_v63, %v481_v60 }
 0x29a   :  { %v484_v4 = vmul.f32 %v483_v2, %v830_v17 }
 0x29c   :  { %v485_v6 = vadd.f32 1e-05, %v484_v4 }
 0x29e   :  { %713 = vrsqrt.f32 %v485_v6  ;;  %vm492_vm8 = vweird.f32 %v485_v6 }
 0x2a4   :  { %v714_v12 = vpop.eup %713 }
 0x2a5   :  { %v487_v14 = vmul.f32 %v714_v12, %v485_v6  ;;  %vm493_vm7 = vweird.f32 %v714_v12 }
 0x2a6   :  { %vm494_vm9 = vmor %vm492_vm8, %vm493_vm7 }
 0x2a7   :  { %v488_v16 = vmul.f32 %v714_v12, %v487_v14 }
 0x2a9   :  { %v489_v21 = vmul.f32 0.5, %v488_v16 }
 0x2ab   :  { %v490_v8 = vsub.f32 1.5, %v489_v21 }
 0x2ad   :  { %v491_v25 = vmul.f32 %v714_v12, %v490_v8 }
 0x2af   :  { %v495_v27 = vsel %vm494_vm9, %v714_v12, %v491_v25 }
 0x2b0   :  { %v496_v28 = vmul.f32 %v495_v27, %v428_v24 }
 0x2b2   :  { %v497_v31 = vmul.f32 %v496_v28, %v475_v53  ;;  %v502_v32 = vperm.slane %v496_v28, 0 }
 0x2b4   :  { %v499_v58 = vrot.slane %v497_v31, 7  ;;  %v503_v33 = vmul.f32 %v502_v32, %v882_v18 }
 0x2b6   :  { %v501_v9 = vsub.f32 %v428_v24, %v499_v58 }
 0x2b8   :  { %v504_v35 = vperm.slane %v501_v9, 1 }
 0x2ba   :  { %v505_v36 = vadd.f32 %v504_v35, %v503_v33 }
 0x2bc   :  { %v507_v37 = vmul.f32 0.70710677, %v505_v36  ;;  %v506_v1 = vmul.f32 0.5, %v505_v36  ;;  %v566_v36 = vld [vmem:[#allocation5 + $0x470] sm:$0xff] }
 0x2be   :  { %v508_v34 = vmul.f32 %v507_v37, %v507_v37 }
 0x2c0   :  { %v509_v54 = vmin.f32 %v508_v34, 16.0 }
 0x2c2   :  { %v510_v38 = vmul.f32 2.1237322e-06, %v509_v54  ;;  %v521_v39 = vmul.f32 3.8918573e-05, %v509_v54 }
 0x2c4   :  { %v511_v40 = vadd.f32 0.00028619796, %v510_v38  ;;  %v522_v41 = vadd.f32 0.001143296, %v521_v39 }
 0x2c6   :  { %v512_v42 = vmul.f32 %v511_v40, %v509_v54  ;;  %v523_v43 = vmul.f32 %v522_v41, %v509_v54 }
 0x2c8   :  { %v524_v44 = vadd.f32 0.014752088, %v523_v43  ;;  %v513_v45 = vadd.f32 0.0036580483, %v512_v42 }
 0x2ca   :  { %v525_v46 = vmul.f32 %v524_v44, %v509_v54  ;;  %v514_v48 = vmul.f32 %v513_v45, %v509_v54 }
 0x2cc   :  { %v526_v47 = vadd.f32 0.112945676, %v525_v46  ;;  %v515_v50 = vadd.f32 0.05243302, %v514_v48 }
 0x2ce   :  { %v527_v30 = vmul.f32 %v526_v47, %v509_v54  ;;  %v516_v52 = vmul.f32 %v515_v50, %v509_v54 }
 0x2d0   :  { %v528_v49 = vadd.f32 0.4994258, %v527_v30  ;;  %v517_v53 = vadd.f32 0.18741608, %v516_v52 }
 0x2d2   :  { %v529_v18 = vmul.f32 %v528_v49, %v509_v54  ;;  %v518_v19 = vmul.f32 %v517_v53, %v509_v54 }
 0x2d4   :  { %v530_v51 = vadd.f32 1.0, %v529_v18  ;;  %v519_v60 = vadd.f32 1.1283791, %v518_v19 }
 0x2d6   :  { %715 = vrcp.f32 %v530_v51  ;;  %v542_v59 = vand.u32 2147483648, %v530_v51  ;;  %v540_v62 = vand.u32 2147483647, %v530_v51  ;;  %vm536_vm11 = vweird.f32 %v530_v51 }
 0x2d7   :  { %v520_v2 = vmul.f32 %v519_v60, %v507_v37 }
 0x2d8   :  { %v543_v0 = vor.u32 1.1754944e-38, %v542_v59  ;;  %vm541_vm13 = vcmp.eq.f32.partialorder %v540_v62, 8.507059e+37 }
 0x2dc   :  { %v716_v55 = vpop.eup %715 }
 0x2dd   :  { %v532_v56 = vmul.f32 %v716_v55, %v530_v51  ;;  %vm537_vm10 = vweird.f32 %v716_v55 }
 0x2de   :  { %vm538_vm12 = vmor %vm536_vm11, %vm537_vm10 }
 0x2df   :  { %v533_v57 = vsub.f32 1.0, %v532_v56 }
 0x2e1   :  { %v534_v61 = vmul.f32 %v716_v55, %v533_v57 }
 0x2e3   :  { %v535_v63 = vadd.f32 %v716_v55, %v534_v61 }
 0x2e5   :  { %v539_v3 = vsel %vm538_vm12, %v716_v55, %v535_v63 }
 0x2e6   :  { %v544_v4 = vsel %vm541_vm13, %v543_v0, %v539_v3 }
 0x2e7   :  { %v545_v5 = vmul.f32 %v544_v4, %v520_v2 }
 0x2e9   :  { %v691_v6 = vclamps-f32 %v545_v5, 1.0 }
 0x2eb   :  { %v548_v7 = vadd.f32 1.0, %v691_v6 }
 0x2ed   :  { %v549_v10 = vmul.f32 %v548_v7, %v506_v1 }
 0x2ef   :  { %583 = vmatmul.f32.vlgmr.msrb.gmra.mxu1 %v549_v10 }
 0x36c   :  { %v584_v11 = vpop.f32.mrf.mxu1 }
 0x36d   :  { %v587_v12 = vrot.slane %v584_v11, 4 }
 0x36f   :  { %v588_v13 = vadd.f32 %v587_v12, %v584_v11 }
 0x371   :  { %v589_v14 = vrot.slane %v588_v13, 2 }
 0x373   :  { %v590_v15 = vadd.f32 %v589_v14, %v588_v13 }
 0x375   :  { %v591_v16 = vrot.slane %v590_v15, 1 }
 0x377   :  { %v592_v20 = vadd.f32 %v591_v16, %v590_v15 }
 0x379   :  { %v593_v21 = vmul.f32 %v592_v20, %v830_v17 }
 0x37b   :  { %v594_v22 = vsub.f32 %v584_v11, %v593_v21 }
 0x37d   :  { %v595_v8 = vmul.f32 %v594_v22, %v594_v22 }
 0x37f   :  { %v596_v23 = vrot.slane %v595_v8, 4 }
 0x381   :  { %v597_v24 = vadd.f32 %v596_v23, %v595_v8 }
 0x383   :  { %v598_v25 = vrot.slane %v597_v24, 2 }
 0x385   :  { %v599_v26 = vadd.f32 %v598_v25, %v597_v24 }
 0x387   :  { %v600_v27 = vrot.slane %v599_v26, 1 }
 0x389   :  { %v601_v28 = vadd.f32 %v600_v27, %v599_v26 }
 0x38b   :  { %v602_v29 = vmul.f32 %v601_v28, %v830_v17 }
 0x38d   :  { %v603_v31 = vadd.f32 1e-05, %v602_v29 }
 0x38f   :  { %717 = vrsqrt.f32 %v603_v31  ;;  %vm610_vm15 = vweird.f32 %v603_v31 }
 0x395   :  { %v718_v32 = vpop.eup %717 }
 0x396   :  { %v605_v58 = vmul.f32 %v718_v32, %v603_v31  ;;  %vm611_vm14 = vweird.f32 %v718_v32 }
 0x397   :  { %vm612_vm0 = vmor %vm610_vm15, %vm611_vm14 }
 0x398   :  { %v606_v9 = vmul.f32 %v718_v32, %v605_v58 }
 0x39a   :  { %v607_v33 = vmul.f32 0.5, %v606_v9 }
 0x39c   :  { %v608_v35 = vsub.f32 1.5, %v607_v33 }
 0x39e   :  { %v609_v37 = vmul.f32 %v718_v32, %v608_v35 }
 0x3a0   :  { %v613_v34 = vsel %vm612_vm0, %v718_v32, %v609_v37 }
 0x3a1   :  { %v614_v54 = vmul.f32 %v613_v34, %v566_v36 }
 0x3a3   :  { %v615_v38 = vmul.f32 %v614_v54, %v593_v21  ;;  %v620_v40 = vperm.slane %v614_v54, 0 }
 0x3a5   :  { %v617_v39 = vrot.slane %v615_v38, 7  ;;  %v621_v42 = vmul.f32 %v620_v40, %v584_v11 }
 0x3a7   :  { %v619_v41 = vsub.f32 %v566_v36, %v617_v39 }
 0x3a9   :  { %v622_v17 = vperm.slane %v619_v41, 1 }
 0x3ab   :  { %v623_v43 = vadd.f32 %v622_v17, %v621_v42 }
 0x3ad   :  { %v625_v44 = vmul.f32 0.70710677, %v623_v43  ;;  %v624_v20 = vmul.f32 0.5, %v623_v43 }
 0x3af   :  { %v626_v45 = vmul.f32 %v625_v44, %v625_v44 }
 0x3b1   :  { %v627_v46 = vmin.f32 %v626_v45, 16.0 }
 0x3b3   :  { %v628_v47 = vmul.f32 2.1237322e-06, %v627_v46  ;;  %v639_v48 = vmul.f32 3.8918573e-05, %v627_v46 }
 0x3b5   :  { %v629_v30 = vadd.f32 0.00028619796, %v628_v47  ;;  %v640_v49 = vadd.f32 0.001143296, %v639_v48 }
 0x3b7   :  { %v630_v50 = vmul.f32 %v629_v30, %v627_v46  ;;  %v641_v18 = vmul.f32 %v640_v49, %v627_v46 }
 0x3b9   :  { %v642_v51 = vadd.f32 0.014752088, %v641_v18  ;;  %v631_v52 = vadd.f32 0.0036580483, %v630_v50 }
 0x3bb   :  { %v643_v53 = vmul.f32 %v642_v51, %v627_v46  ;;  %v632_v19 = vmul.f32 %v631_v52, %v627_v46 }
 0x3bd   :  { %v644_v55 = vadd.f32 0.112945676, %v643_v53  ;;  %v633_v59 = vadd.f32 0.05243302, %v632_v19 }
 0x3bf   :  { %v645_v56 = vmul.f32 %v644_v55, %v627_v46  ;;  %v634_v62 = vmul.f32 %v633_v59, %v627_v46 }
 0x3c1   :  { %v646_v57 = vadd.f32 0.4994258, %v645_v56  ;;  %v635_v63 = vadd.f32 0.18741608, %v634_v62 }
 0x3c3   :  { %v647_v60 = vmul.f32 %v646_v57, %v627_v46  ;;  %v636_v2 = vmul.f32 %v635_v63, %v627_v46 }
 0x3c5   :  { %v648_v61 = vadd.f32 1.0, %v647_v60  ;;  %v637_v6 = vadd.f32 1.1283791, %v636_v2 }
 0x3c7   :  { %719 = vrcp.f32 %v648_v61  ;;  %v660_v5 = vand.u32 2147483648, %v648_v61  ;;  %v658_v7 = vand.u32 2147483647, %v648_v61  ;;  %vm654_vm2 = vweird.f32 %v648_v61 }
 0x3c8   :  { %v638_v12 = vmul.f32 %v637_v6, %v625_v44 }
 0x3c9   :  { %v661_v11 = vor.u32 1.1754944e-38, %v660_v5  ;;  %vm659_vm4 = vcmp.eq.f32.partialorder %v658_v7, 8.507059e+37 }
 0x3cd   :  { %v720_v0 = vpop.eup %719 }
 0x3ce   :  { %v650_v3 = vmul.f32 %v720_v0, %v648_v61  ;;  %vm655_vm1 = vweird.f32 %v720_v0 }
 0x3cf   :  { %vm656_vm3 = vmor %vm654_vm2, %vm655_vm1 }
 0x3d0   :  { %v651_v4 = vsub.f32 1.0, %v650_v3 }
 0x3d2   :  { %v652_v1 = vmul.f32 %v720_v0, %v651_v4 }
 0x3d4   :  { %v653_v10 = vadd.f32 %v720_v0, %v652_v1 }
 0x3d6   :  { %v657_v13 = vsel %vm656_vm3, %v720_v0, %v653_v10 }
 0x3d7   :  { %v662_v14 = vsel %vm659_vm4, %v661_v11, %v657_v13 }
 0x3d8   :  { %v663_v15 = vmul.f32 %v662_v14, %v638_v12 }
 0x3da   :  { %v692_v16 = vclamps-f32 %v663_v15, 1.0 }
 0x3dc   :  { %v666_v21 = vadd.f32 1.0, %v692_v16 }
 0x3de   :  { %v667_v22 = vmul.f32 %v666_v21, %v624_v20 }
 0x3e0   :  { %668 = vst [vmem:[#allocation7] sm:$0xff] %v667_v22 }
 0x3e1   :  { %679 = dma.vmem_to_hbm [thread:$0]  %s675_s1, 128, %s677_s23, [#allocation4]  }
 0x3e2   :  { %797 = dma.done.wait [#allocation4], 128  }
 0x3e3   :  { %798 = vsyncadd [#allocation4], 4294967168 }
 0x3e4   :  { %684 = vsyncpa [#allocation3], 1 }
 0x3e5   :  { %685 = vsyncpa [#allocation6], 1 }
 0x3e6   :  { %686 = vsyncpa [#allocation4], 1 }

</bundles_post_ra>
